<compile_context>
chip_gen: v7x
topology: tpu7x:2x2x1
jax: 0.10.0
libtpu: 0.0.40
codegen_flags: <defaults>
</compile_context>

<pallas_src>
import functools

import jax
import jax.numpy as jnp
from jax.experimental import pallas as pl
from jax.experimental.pallas import tpu as pltpu

LANE = 128


def _round_up(x, m):
    return (x + m - 1) // m * m


def _make_mlp_kernel(layer_specs, n_layers):
    """Fused kernel: for one batch tile, run every layer with weights in VMEM.

    refs layout: (x, w_0..w_{L-1}, b_0..b_{L-1}, out)
    layer_specs: tuple of (activate: bool, residual: bool), static.
    """

    def kernel(*refs):
        x_ref = refs[0]
        w_refs = refs[1:1 + n_layers]
        b_refs = refs[1 + n_layers:1 + 2 * n_layers]
        o_ref = refs[1 + 2 * n_layers]

        h = x_ref[...]                                  # compute dtype (bf16)
        y = None
        for li, (activate, residual) in enumerate(layer_specs):
            # MXU matmul in bf16 with f32 accumulation.
            y = jnp.dot(h, w_refs[li][...], preferred_element_type=jnp.float32)
            y = y + b_refs[li][...].astype(jnp.float32)  # (1, N) broadcasts over rows
            if activate:
                y = jnp.maximum(y, 0.0)                  # ReLU (f32 on VPU)
            if residual:
                y = y + h.astype(jnp.float32)            # residual in f32
            h = y.astype(x_ref.dtype)                    # back to bf16 for next MXU push
        o_ref[...] = y.astype(o_ref.dtype)

    return kernel


def mlp_forward(params, x, *, use_residual=False,
                compute_dtype=jnp.bfloat16, tile_m=256):
    """Mirrors MLP.forward with a single fused pallas_call.

    params: list of (w, b) with w shaped (in_features, out_features).
    x:      (batch, input_dim).
    """
    n_layers = len(params)
    M, K0 = x.shape
    dims = [K0] + [w.shape[1] for (w, _) in params]
    pdims = [_round_up(d, LANE) for d in dims]           # lane-dense padded dims

    # --- batch tile selection / padding (wrapper-side; rows are independent) ---
    sub = 16 if compute_dtype == jnp.bfloat16 else 8     # sublane packing granule
    tm = tile_m if M >= tile_m else _round_up(M, sub)
    Mp = _round_up(M, tm)

    xp = jnp.zeros((Mp, pdims[0]), compute_dtype).at[:M, :K0].set(
        x.astype(compute_dtype))

    # --- zero-pad weights / biases to (128-multiple, 128-multiple) ---
    ws, bs = [], []
    for li, (w, b) in enumerate(params):
        Kp, Np = pdims[li], pdims[li + 1]
        wp = jnp.zeros((Kp, Np), compute_dtype).at[:w.shape[0], :w.shape[1]].set(
            w.astype(compute_dtype))
        bp = jnp.zeros((1, Np), compute_dtype).at[0, :b.shape[0]].set(
            b.astype(compute_dtype))
        ws.append(wp)
        bs.append(bp)

    # --- static per-layer behaviour (matches the PyTorch module) ---
    layer_specs = []
    for li in range(n_layers):
        activate = li < n_layers - 1                      # input + hidden layers
        residual = use_residual and 0 < li < n_layers - 1  # hidden layers only
        if residual:
            assert dims[li] == dims[li + 1], "residual requires matching dims"
        layer_specs.append((activate, residual))
    layer_specs = tuple(layer_specs)

    # --- block specs: x/out tiled over batch, weights/biases fully resident ---
    in_specs = [pl.BlockSpec((tm, pdims[0]), lambda i: (i, 0))]
    for li in range(n_layers):
        in_specs.append(pl.BlockSpec((pdims[li], pdims[li + 1]), lambda i: (0, 0)))
    for li in range(n_layers):
        in_specs.append(pl.BlockSpec((1, pdims[li + 1]), lambda i: (0, 0)))
    out_spec = pl.BlockSpec((tm, pdims[-1]), lambda i: (i, 0))

    # --- advisory cost estimate for the XLA scheduler ---
    itemsize = jnp.dtype(compute_dtype).itemsize
    flops = sum(2 * Mp * pdims[li] * pdims[li + 1] for li in range(n_layers))
    bytes_accessed = (Mp * pdims[0] * itemsize
                      + sum(w.size * itemsize for w in ws)
                      + sum(b.size * itemsize for b in bs)
                      + Mp * pdims[-1] * 4)

    out = pl.pallas_call(
        _make_mlp_kernel(layer_specs, n_layers),
        out_shape=jax.ShapeDtypeStruct((Mp, pdims[-1]), jnp.float32),
        grid_spec=pltpu.PrefetchScalarGridSpec(
            num_scalar_prefetch=0,
            grid=(Mp // tm,),
            in_specs=in_specs,
            out_specs=out_spec,
        ),
        compiler_params=pltpu.CompilerParams(
            dimension_semantics=("parallel",),
            vmem_limit_bytes=64 * 1024 * 1024,
        ),
        cost_estimate=pl.CostEstimate(
            flops=flops, transcendentals=0, bytes_accessed=bytes_accessed),
    )(xp, *ws, *bs)

    # Slice real batch rows and real output features back out.
    return out[:M, :dims[-1]]


def init_mlp_params(key, input_dim, hidden_dims, output_dim, dtype=jnp.float32):
    """Deterministic parameter init (uniform, like PyTorch's default fan_in bound)."""
    dims = [input_dim] + list(hidden_dims) + [output_dim]
    params = []
    for i in range(len(dims) - 1):
        key, kw, kb = jax.random.split(key, 3)
        bound = 1.0 / jnp.sqrt(dims[i])
        w = jax.random.uniform(kw, (dims[i], dims[i + 1]), dtype, -bound, bound)
        b = jax.random.uniform(kb, (dims[i + 1],), dtype, -bound, bound)
        params.append((w, b))
    return params


def mlp_reference(params, x, *, use_residual=False, compute_dtype=jnp.bfloat16):
    """Pure-JAX reference mirroring the kernel's bf16-storage / f32-accum scheme."""
    n_layers = len(params)
    h = x.astype(compute_dtype)
    y = None
    for li, (w, b) in enumerate(params):
        y = jnp.dot(h.astype(jnp.float32),
                    w.astype(compute_dtype).astype(jnp.float32),
                    precision=jax.lax.Precision.HIGHEST)
        y = y + b.astype(compute_dtype).astype(jnp.float32)
        if li < n_layers - 1:
            y = jnp.maximum(y, 0.0)
            if use_residual and li > 0:
                y = y + h.astype(jnp.float32)
        h = y.astype(compute_dtype)
    return y


if __name__ == "__main__":
    key = jax.random.PRNGKey(0)

    batch = 16
    input_dim = 32
    hidden_dims = [64, 64, 64]
    output_dim = 8
    dropout = 0.1          # eval mode -> identity
    use_residual = True

    key, kx, kp = jax.random.split(key, 3)
    x = jax.random.normal(kx, (batch, input_dim), jnp.float32)
    params = init_mlp_params(kp, input_dim, hidden_dims, output_dim)

    fwd = jax.jit(functools.partial(mlp_forward, use_residual=use_residual))
    out = jax.block_until_ready(fwd(params, x))

    ref = mlp_reference(params, x, use_residual=use_residual)
    assert out.shape == (batch, output_dim)
    assert jnp.allclose(out, ref, atol=1e-2, rtol=1e-2), "mismatch vs reference"

    print("KERNEL_OK")
</pallas_src>

<mosaic_0001>
module attributes {stable_mosaic.version = 11 : i64} {
  func.func @kernel(%arg0: i32, %arg1: memref<16x128xbf16, #tpu.memory_space<vmem>>, %arg2: memref<128x128xbf16, #tpu.memory_space<vmem>>, %arg3: memref<128x128xbf16, #tpu.memory_space<vmem>>, %arg4: memref<128x128xbf16, #tpu.memory_space<vmem>>, %arg5: memref<128x128xbf16, #tpu.memory_space<vmem>>, %arg6: memref<1x128xbf16, #tpu.memory_space<vmem>>, %arg7: memref<1x128xbf16, #tpu.memory_space<vmem>>, %arg8: memref<1x128xbf16, #tpu.memory_space<vmem>>, %arg9: memref<1x128xbf16, #tpu.memory_space<vmem>>, %arg10: memref<16x128xf32, #tpu.memory_space<vmem>>) attributes {dimension_semantics = [#tpu.dimension_semantics<parallel>], iteration_bounds = array<i64: 1>, scalar_prefetch = 0 : i64, scratch_operands = 0 : i64, tpu.core_type = #tpu.core_type<tc>, window_params = [{transform_indices = @transform_0, window_bounds = array<i64: 16, 128>}, {pipeline_mode = #tpu.pipeline_mode<synchronous>, transform_indices = @transform_1, window_bounds = array<i64: 128, 128>}, {pipeline_mode = #tpu.pipeline_mode<synchronous>, transform_indices = @transform_2, window_bounds = array<i64: 128, 128>}, {pipeline_mode = #tpu.pipeline_mode<synchronous>, transform_indices = @transform_3, window_bounds = array<i64: 128, 128>}, {pipeline_mode = #tpu.pipeline_mode<synchronous>, transform_indices = @transform_4, window_bounds = array<i64: 128, 128>}, {pipeline_mode = #tpu.pipeline_mode<synchronous>, transform_indices = @transform_5, window_bounds = array<i64: 1, 128>}, {pipeline_mode = #tpu.pipeline_mode<synchronous>, transform_indices = @transform_6, window_bounds = array<i64: 1, 128>}, {pipeline_mode = #tpu.pipeline_mode<synchronous>, transform_indices = @transform_7, window_bounds = array<i64: 1, 128>}, {pipeline_mode = #tpu.pipeline_mode<synchronous>, transform_indices = @transform_8, window_bounds = array<i64: 1, 128>}, {transform_indices = @transform_9, window_bounds = array<i64: 16, 128>}]} {
    %c0 = arith.constant 0 : index
    %c0_0 = arith.constant 0 : index
    %0 = vector.load %arg1[%c0, %c0_0] : memref<16x128xbf16, #tpu.memory_space<vmem>>, vector<16x128xbf16>
    %c0_1 = arith.constant 0 : index
    %c0_2 = arith.constant 0 : index
    %1 = vector.load %arg2[%c0_1, %c0_2] : memref<128x128xbf16, #tpu.memory_space<vmem>>, vector<128x128xbf16>
    %cst = arith.constant dense<0.000000e+00> : vector<16x128xf32>
    %2 = tpu.matmul %0, %1, %cst {dimension_numbers = #tpu.dot_dimension_numbers<[1], [0], [0], [1], [0, 0, 1, 1], [], []>} : vector<16x128xbf16>, vector<128x128xbf16>, vector<16x128xf32> -> vector<16x128xf32>
    %c0_3 = arith.constant 0 : index
    %c0_4 = arith.constant 0 : index
    %3 = vector.load %arg6[%c0_3, %c0_4] : memref<1x128xbf16, #tpu.memory_space<vmem>>, vector<1x128xbf16>
    %4 = arith.extf %3 : vector<1x128xbf16> to vector<1x128xf32>
    %5 = vector.broadcast %4 : vector<1x128xf32> to vector<16x128xf32>
    %6 = arith.addf %2, %5 : vector<16x128xf32>
    %cst_5 = arith.constant 0.000000e+00 : f32
    %7 = vector.broadcast %cst_5 : f32 to vector<16x128xf32>
    %8 = arith.maximumf %6, %7 : vector<16x128xf32>
    %9 = arith.truncf %8 : vector<16x128xf32> to vector<16x128xbf16>
    %c0_6 = arith.constant 0 : index
    %c0_7 = arith.constant 0 : index
    %10 = vector.load %arg3[%c0_6, %c0_7] : memref<128x128xbf16, #tpu.memory_space<vmem>>, vector<128x128xbf16>
    %cst_8 = arith.constant dense<0.000000e+00> : vector<16x128xf32>
    %11 = tpu.matmul %9, %10, %cst_8 {dimension_numbers = #tpu.dot_dimension_numbers<[1], [0], [0], [1], [0, 0, 1, 1], [], []>} : vector<16x128xbf16>, vector<128x128xbf16>, vector<16x128xf32> -> vector<16x128xf32>
    %c0_9 = arith.constant 0 : index
    %c0_10 = arith.constant 0 : index
    %12 = vector.load %arg7[%c0_9, %c0_10] : memref<1x128xbf16, #tpu.memory_space<vmem>>, vector<1x128xbf16>
    %13 = arith.extf %12 : vector<1x128xbf16> to vector<1x128xf32>
    %14 = vector.broadcast %13 : vector<1x128xf32> to vector<16x128xf32>
    %15 = arith.addf %11, %14 : vector<16x128xf32>
    %cst_11 = arith.constant 0.000000e+00 : f32
    %16 = vector.broadcast %cst_11 : f32 to vector<16x128xf32>
    %17 = arith.maximumf %15, %16 : vector<16x128xf32>
    %18 = arith.extf %9 : vector<16x128xbf16> to vector<16x128xf32>
    %19 = arith.addf %17, %18 : vector<16x128xf32>
    %20 = arith.truncf %19 : vector<16x128xf32> to vector<16x128xbf16>
    %c0_12 = arith.constant 0 : index
    %c0_13 = arith.constant 0 : index
    %21 = vector.load %arg4[%c0_12, %c0_13] : memref<128x128xbf16, #tpu.memory_space<vmem>>, vector<128x128xbf16>
    %cst_14 = arith.constant dense<0.000000e+00> : vector<16x128xf32>
    %22 = tpu.matmul %20, %21, %cst_14 {dimension_numbers = #tpu.dot_dimension_numbers<[1], [0], [0], [1], [0, 0, 1, 1], [], []>} : vector<16x128xbf16>, vector<128x128xbf16>, vector<16x128xf32> -> vector<16x128xf32>
    %c0_15 = arith.constant 0 : index
    %c0_16 = arith.constant 0 : index
    %23 = vector.load %arg8[%c0_15, %c0_16] : memref<1x128xbf16, #tpu.memory_space<vmem>>, vector<1x128xbf16>
    %24 = arith.extf %23 : vector<1x128xbf16> to vector<1x128xf32>
    %25 = vector.broadcast %24 : vector<1x128xf32> to vector<16x128xf32>
    %26 = arith.addf %22, %25 : vector<16x128xf32>
    %cst_17 = arith.constant 0.000000e+00 : f32
    %27 = vector.broadcast %cst_17 : f32 to vector<16x128xf32>
    %28 = arith.maximumf %26, %27 : vector<16x128xf32>
    %29 = arith.extf %20 : vector<16x128xbf16> to vector<16x128xf32>
    %30 = arith.addf %28, %29 : vector<16x128xf32>
    %31 = arith.truncf %30 : vector<16x128xf32> to vector<16x128xbf16>
    %c0_18 = arith.constant 0 : index
    %c0_19 = arith.constant 0 : index
    %32 = vector.load %arg5[%c0_18, %c0_19] : memref<128x128xbf16, #tpu.memory_space<vmem>>, vector<128x128xbf16>
    %cst_20 = arith.constant dense<0.000000e+00> : vector<16x128xf32>
    %33 = tpu.matmul %31, %32, %cst_20 {dimension_numbers = #tpu.dot_dimension_numbers<[1], [0], [0], [1], [0, 0, 1, 1], [], []>} : vector<16x128xbf16>, vector<128x128xbf16>, vector<16x128xf32> -> vector<16x128xf32>
    %c0_21 = arith.constant 0 : index
    %c0_22 = arith.constant 0 : index
    %34 = vector.load %arg9[%c0_21, %c0_22] : memref<1x128xbf16, #tpu.memory_space<vmem>>, vector<1x128xbf16>
    %35 = arith.extf %34 : vector<1x128xbf16> to vector<1x128xf32>
    %36 = vector.broadcast %35 : vector<1x128xf32> to vector<16x128xf32>
    %37 = arith.addf %33, %36 : vector<16x128xf32>
    %c0_23 = arith.constant 0 : index
    %c0_24 = arith.constant 0 : index
    %38 = vector.load %arg10[%c0_23, %c0_24] : memref<16x128xf32, #tpu.memory_space<vmem>>, vector<16x128xf32>
    tpu.vector_store %arg10[%c0_23, %c0_24], %37 {strides = array<i32>} : memref<16x128xf32, #tpu.memory_space<vmem>>, vector<16x128xf32>,
    return
  }
  func.func @transform_0(%arg0: i32) -> (i32, i32) {
    %c0_i32 = arith.constant 0 : i32
    %c0_i32_0 = arith.constant 0 : i32
    return %arg0, %c0_i32 : i32, i32
  }
  func.func @transform_1(%arg0: i32) -> (i32, i32) {
    %c0_i32 = arith.constant 0 : i32
    %c0_i32_0 = arith.constant 0 : i32
    %c0_i32_1 = arith.constant 0 : i32
    return %c0_i32, %c0_i32_0 : i32, i32
  }
  func.func @transform_2(%arg0: i32) -> (i32, i32) {
    %c0_i32 = arith.constant 0 : i32
    %c0_i32_0 = arith.constant 0 : i32
    %c0_i32_1 = arith.constant 0 : i32
    return %c0_i32, %c0_i32_0 : i32, i32
  }
  func.func @transform_3(%arg0: i32) -> (i32, i32) {
    %c0_i32 = arith.constant 0 : i32
    %c0_i32_0 = arith.constant 0 : i32
    %c0_i32_1 = arith.constant 0 : i32
    return %c0_i32, %c0_i32_0 : i32, i32
  }
  func.func @transform_4(%arg0: i32) -> (i32, i32) {
    %c0_i32 = arith.constant 0 : i32
    %c0_i32_0 = arith.constant 0 : i32
    %c0_i32_1 = arith.constant 0 : i32
    return %c0_i32, %c0_i32_0 : i32, i32
  }
  func.func @transform_5(%arg0: i32) -> (i32, i32) {
    %c0_i32 = arith.constant 0 : i32
    %c0_i32_0 = arith.constant 0 : i32
    %c0_i32_1 = arith.constant 0 : i32
    return %c0_i32, %c0_i32_0 : i32, i32
  }
  func.func @transform_6(%arg0: i32) -> (i32, i32) {
    %c0_i32 = arith.constant 0 : i32
    %c0_i32_0 = arith.constant 0 : i32
    %c0_i32_1 = arith.constant 0 : i32
    return %c0_i32, %c0_i32_0 : i32, i32
  }
  func.func @transform_7(%arg0: i32) -> (i32, i32) {
    %c0_i32 = arith.constant 0 : i32
    %c0_i32_0 = arith.constant 0 : i32
    %c0_i32_1 = arith.constant 0 : i32
    return %c0_i32, %c0_i32_0 : i32, i32
  }
  func.func @transform_8(%arg0: i32) -> (i32, i32) {
    %c0_i32 = arith.constant 0 : i32
    %c0_i32_0 = arith.constant 0 : i32
    %c0_i32_1 = arith.constant 0 : i32
    return %c0_i32, %c0_i32_0 : i32, i32
  }
  func.func @transform_9(%arg0: i32) -> (i32, i32) {
    %c0_i32 = arith.constant 0 : i32
    %c0_i32_0 = arith.constant 0 : i32
    return %arg0, %c0_i32 : i32, i32
  }
}

</mosaic_0001>

<bundles_post_ra>
// kernel: mlp_forward.1
= control target key start
LH: loop header
LB: loop body
LE: loop exit
PB: predicated region body
PF: predicated region fallthrough
CT: control target
= control target key end

     0   :  { %14 = vsyncpa [#allocation3], 0  ;;  %s1331_s0 = inlined_call_operand.hbm [shape: bf16[16,128], index: 0, kind: input, shape index: {}]   ;;  %s1332_s1 = inlined_call_operand.hbm [shape: bf16[128,128], index: 1, kind: input, shape index: {}]   ;;  %s1333_s2 = inlined_call_operand.hbm [shape: bf16[128,128], index: 2, kind: input, shape index: {}]   ;;  %s1334_s3 = inlined_call_operand.hbm [shape: bf16[128,128], index: 3, kind: input, shape index: {}]   ;;  %s1335_s4 = inlined_call_operand.hbm [shape: bf16[128,128], index: 4, kind: input, shape index: {}]   ;;  %s1336_s5 = inlined_call_operand.hbm [shape: bf16[1,128], index: 5, kind: input, shape index: {}]   ;;  %s1337_s6 = inlined_call_operand.hbm [shape: bf16[1,128], index: 6, kind: input, shape index: {}]   ;;  %s1338_s7 = inlined_call_operand.hbm [shape: bf16[1,128], index: 7, kind: input, shape index: {}]   ;;  %s1339_s8 = inlined_call_operand.hbm [shape: bf16[1,128], index: 8, kind: input, shape index: {}]   ;;  %s1340_s9 = inlined_call_operand.hbm [shape: f32[16,128], index: 9, kind: output, shape index: {}]  }
   0x1   :  { %15 = vsyncpa [#allocation6], 0 }
   0x2   :  { %16 = vsyncpa [#allocation9], 0 }
   0x3   :  { %17 = vsyncpa [#allocation12], 0 }
   0x4   :  { %18 = vsyncpa [#allocation15], 0 }
   0x5   :  { %19 = vsyncpa [#allocation4], 0  ;;  %s1070_s30 = smov [#allocation5]   ;;  %s1071_s11 = smov [#allocation8]  }
   0x6   :  { %s37_s10 = sshll.u32 %s1070_s30, 4  ;;  %s61_s12 = sshll.u32 %s1071_s11, 4  ;;  %s38_s10 = int_to_ptr.vmem [resolvable:$true] %s37_s10  ;;  %s1136_s12 = int_to_ptr.vmem [resolvable:$true] %s61_s12 }
   0x7   :  { %s838_s15 = scalar_lea.hbm %s1332_s1, 1024 }
   0x8   :  { %p839_p0 = scmp.ne.s32.totalorder %s1332_s1, %s838_s15  ;;  %p842_p1 = scmp.lt.u32.totalorder %s838_s15, %s1332_s1 }
   0xa   :  { %p844_p2 = pnand %p842_p1, %p839_p0 }
   0xc   :  { %847 = shalt.err (!%p844_p2)
}
   0xd   :  { %s848_s20 = scalar_lea.vmem %s38_s10, 1024  ;;  %p853_p4 = scmp.lt.s32.totalorder %s38_s10, %s38_s10 }
   0xe   :  { %p849_p3 = scmp.ne.s32.totalorder %s38_s10, %s848_s20  ;;  %p854_p5 = scmp.lt.s32.totalorder %s848_s20, %s848_s20 }
  0x10   :  { %p855_p6 = por %p854_p5, %p853_p4 }
  0x12   :  { %p856_p7 = pnand %p855_p6, %p849_p3 }
  0x14   :  { %859 = shalt.err (!%p856_p7)
}
  0x15   :  { %s1072_s21 = smov 64   ;;  %s1073_s22 = smov 4  }
  0x16   :  { %43 = dma.hbm_to_vmem [thread:$0]  %s1332_s1, 1024, %s38_s10, [#allocation6], %s1072_s21, %s1072_s21, %s1073_s22  }
  0x17   :  { %s860_s27 = scalar_lea.hbm %s1334_s3, 1024 }
  0x18   :  { %p861_p8 = scmp.ne.s32.totalorder %s1334_s3, %s860_s27  ;;  %p864_p9 = scmp.lt.u32.totalorder %s860_s27, %s1334_s3 }
  0x1a   :  { %p866_p10 = pnand %p864_p9, %p861_p8 }
  0x1c   :  { %869 = shalt.err (!%p866_p10)
}
  0x1d   :  { %s870_s13 = scalar_lea.vmem %s1136_s12, 1024  ;;  %p875_p12 = scmp.lt.s32.totalorder %s1136_s12, %s1136_s12 }
  0x1e   :  { %p871_p11 = scmp.ne.s32.totalorder %s1136_s12, %s870_s13  ;;  %p876_p13 = scmp.lt.s32.totalorder %s870_s13, %s870_s13 }
  0x20   :  { %p877_p0 = por %p876_p13, %p875_p12 }
  0x22   :  { %p878_p1 = pnand %p877_p0, %p871_p11 }
  0x24   :  { %881 = shalt.err (!%p878_p1)
}
  0x25   :  { %67 = dma.hbm_to_vmem [thread:$0]  %s1334_s3, 1024, %s1136_s12, [#allocation9], %s1072_s21, %s1072_s21, %s1073_s22  }
  0x26   :  { %s1074_s14 = smov [#allocation11]   ;;  %s1075_s16 = smov [#allocation14]  }
  0x27   :  { %s86_s15 = sshll.u32 %s1074_s14, 4  ;;  %s106_s17 = sshll.u32 %s1075_s16, 4  ;;  %s87_s15 = int_to_ptr.vmem [resolvable:$true] %s86_s15  ;;  %s107_s17 = int_to_ptr.vmem [resolvable:$true] %s106_s17 }
  0x28   :  { %s882_s20 = scalar_lea.hbm %s1336_s5, 16 }
  0x29   :  { %p883_p2 = scmp.ne.s32.totalorder %s1336_s5, %s882_s20  ;;  %p886_p3 = scmp.lt.u32.totalorder %s882_s20, %s1336_s5 }
  0x2b   :  { %p888_p4 = pnand %p886_p3, %p883_p2 }
  0x2d   :  { %891 = shalt.err (!%p888_p4)
}
  0x2e   :  { %s892_s3 = scalar_lea.vmem %s87_s15, 16  ;;  %s896_s12 = scalar_lea.vmem %s87_s15, 32 }
  0x2f   :  { %p893_p5 = scmp.ne.s32.totalorder %s87_s15, %s892_s3  ;;  %p897_p6 = scmp.lt.s32.totalorder %s87_s15, %s87_s15 }
  0x30   :  { %p898_p7 = scmp.lt.s32.totalorder %s896_s12, %s892_s3 }
  0x32   :  { %p899_p8 = por %p898_p7, %p897_p6 }
  0x34   :  { %p900_p9 = pnand %p899_p8, %p893_p5 }
  0x36   :  { %903 = shalt.err (!%p900_p9)
}
  0x37   :  { %89 = dma.hbm_to_vmem [thread:$0]  %s1336_s5, 16, %s87_s15, [#allocation12]  }
  0x38   :  { %s904_s11 = scalar_lea.hbm %s1338_s7, 16 }
  0x39   :  { %p905_p10 = scmp.ne.s32.totalorder %s1338_s7, %s904_s11  ;;  %p908_p11 = scmp.lt.u32.totalorder %s904_s11, %s1338_s7 }
  0x3b   :  { %p910_p12 = pnand %p908_p11, %p905_p10 }
  0x3d   :  { %913 = shalt.err (!%p910_p12)
}
  0x3e   :  { %s914_s16 = scalar_lea.vmem %s107_s17, 16  ;;  %s918_s18 = scalar_lea.vmem %s107_s17, 32 }
  0x3f   :  { %p915_p13 = scmp.ne.s32.totalorder %s107_s17, %s914_s16  ;;  %p919_p0 = scmp.lt.s32.totalorder %s107_s17, %s107_s17 }
  0x40   :  { %p920_p1 = scmp.lt.s32.totalorder %s918_s18, %s914_s16 }
  0x42   :  { %p921_p2 = por %p920_p1, %p919_p0 }
  0x44   :  { %p922_p3 = pnand %p921_p2, %p915_p13 }
  0x46   :  { %925 = shalt.err (!%p922_p3)
}
  0x47   :  { %109 = dma.hbm_to_vmem [thread:$0]  %s1338_s7, 16, %s107_s17, [#allocation15]  }
  0x48   :  { %s1076_s19 = smov [#allocation2]   ;;  %s1077_s23 = smov [#allocation7]  }
  0x49   :  { %s25_s20 = sshll.u32 %s1076_s19, 4  ;;  %s49_s24 = sshll.u32 %s1077_s23, 4  ;;  %s26_s20 = int_to_ptr.vmem [resolvable:$true] %s25_s20  ;;  %s1197_s24 = int_to_ptr.vmem [resolvable:$true] %s49_s24 }
  0x4a   :  { %s926_s3 = scalar_lea.hbm %s1331_s0, 128 }
  0x4b   :  { %p927_p4 = scmp.ne.s32.totalorder %s1331_s0, %s926_s3  ;;  %p930_p5 = scmp.lt.u32.totalorder %s926_s3, %s1331_s0 }
  0x4d   :  { %p932_p6 = pnand %p930_p5, %p927_p4 }
  0x4f   :  { %935 = shalt.err (!%p932_p6)
}
  0x50   :  { %s936_s7 = scalar_lea.vmem %s26_s20, 128  ;;  %p941_p8 = scmp.lt.s32.totalorder %s26_s20, %s26_s20 }
  0x51   :  { %p937_p7 = scmp.ne.s32.totalorder %s26_s20, %s936_s7  ;;  %p942_p9 = scmp.lt.s32.totalorder %s936_s7, %s936_s7 }
  0x53   :  { %p943_p10 = por %p942_p9, %p941_p8 }
  0x55   :  { %p944_p11 = pnand %p943_p10, %p937_p7 }
  0x57   :  { %947 = shalt.err (!%p944_p11)
}
  0x58   :  { %31 = dma.hbm_to_vmem [thread:$0]  %s1331_s0, 128, %s26_s20, [#allocation3], %s1072_s21, %s1072_s21, %s1073_s22  }
  0x59   :  { %s948_s1 = scalar_lea.hbm %s1333_s2, 1024 }
  0x5a   :  { %p949_p12 = scmp.ne.s32.totalorder %s1333_s2, %s948_s1  ;;  %p952_p13 = scmp.lt.u32.totalorder %s948_s1, %s1333_s2 }
  0x5c   :  { %p954_p0 = pnand %p952_p13, %p949_p12 }
  0x5e   :  { %957 = shalt.err (!%p954_p0)
}
  0x5f   :  { %s958_s5 = scalar_lea.vmem %s1197_s24, 1024  ;;  %p963_p2 = scmp.lt.s32.totalorder %s1197_s24, %s1197_s24 }
  0x60   :  { %p959_p1 = scmp.ne.s32.totalorder %s1197_s24, %s958_s5  ;;  %p964_p3 = scmp.lt.s32.totalorder %s958_s5, %s958_s5 }
  0x62   :  { %p965_p4 = por %p964_p3, %p963_p2 }
  0x64   :  { %p966_p5 = pnand %p965_p4, %p959_p1 }
  0x66   :  { %969 = shalt.err (!%p966_p5)
}
  0x67   :  { %55 = dma.hbm_to_vmem [thread:$0]  %s1333_s2, 1024, %s1197_s24, [#allocation6], %s1072_s21, %s1072_s21, %s1073_s22  }
  0x68   :  { %s1078_s19 = smov [#allocation10]   ;;  %s1079_s23 = smov [#allocation13]  }
  0x69   :  { %s73_s20 = sshll.u32 %s1078_s19, 4  ;;  %s96_s25 = sshll.u32 %s1079_s23, 4  ;;  %s74_s20 = int_to_ptr.vmem [resolvable:$true] %s73_s20  ;;  %s97_s25 = int_to_ptr.vmem [resolvable:$true] %s96_s25 }
  0x6a   :  { %s970_s12 = scalar_lea.hbm %s1335_s4, 1024 }
  0x6b   :  { %p971_p6 = scmp.ne.s32.totalorder %s1335_s4, %s970_s12  ;;  %p974_p7 = scmp.lt.u32.totalorder %s970_s12, %s1335_s4 }
  0x6d   :  { %p976_p8 = pnand %p974_p7, %p971_p6 }
  0x6f   :  { %979 = shalt.err (!%p976_p8)
}
  0x70   :  { %s980_s2 = scalar_lea.vmem %s74_s20, 1024  ;;  %p985_p10 = scmp.lt.s32.totalorder %s74_s20, %s74_s20 }
  0x71   :  { %p981_p9 = scmp.ne.s32.totalorder %s74_s20, %s980_s2  ;;  %p986_p11 = scmp.lt.s32.totalorder %s980_s2, %s980_s2 }
  0x73   :  { %p987_p12 = por %p986_p11, %p985_p10 }
  0x75   :  { %p988_p13 = pnand %p987_p12, %p981_p9 }
  0x77   :  { %991 = shalt.err (!%p988_p13)
}
  0x78   :  { %79 = dma.hbm_to_vmem [thread:$0]  %s1335_s4, 1024, %s74_s20, [#allocation9], %s1072_s21, %s1072_s21, %s1073_s22  }
  0x79   :  { %s992_s13 = scalar_lea.hbm %s1337_s6, 16 }
  0x7a   :  { %p993_p0 = scmp.ne.s32.totalorder %s1337_s6, %s992_s13  ;;  %p996_p1 = scmp.lt.u32.totalorder %s992_s13, %s1337_s6 }
  0x7c   :  { %p998_p2 = pnand %p996_p1, %p993_p0 }
  0x7e   :  { %1001 = shalt.err (!%p998_p2)
}
  0x7f   :  { %s1002_s18 = scalar_lea.vmem %s97_s25, 16  ;;  %s1006_s5 = scalar_lea.vmem %s97_s25, 32 }
  0x80   :  { %p1003_p3 = scmp.ne.s32.totalorder %s97_s25, %s1002_s18  ;;  %p1007_p4 = scmp.lt.s32.totalorder %s97_s25, %s97_s25 }
  0x81   :  { %p1008_p5 = scmp.lt.s32.totalorder %s1006_s5, %s1002_s18 }
  0x83   :  { %p1009_p6 = por %p1008_p5, %p1007_p4 }
  0x85   :  { %p1010_p7 = pnand %p1009_p6, %p1003_p3 }
  0x87   :  { %1013 = shalt.err (!%p1010_p7)
}
  0x88   :  { %99 = dma.hbm_to_vmem [thread:$0]  %s1337_s6, 16, %s97_s25, [#allocation12]  }
  0x89   :  { %s1080_s22 = smov [#allocation16]   ;;  %s1014_s20 = scalar_lea.hbm %s1339_s8, 16 }
  0x8a   :  { %s116_s0 = sshll.u32 %s1080_s22, 4  ;;  %p1015_p8 = scmp.ne.s32.totalorder %s1339_s8, %s1014_s20  ;;  %s117_s0 = int_to_ptr.vmem [resolvable:$true] %s116_s0 }
  0x8b   :  { %p1018_p9 = scmp.lt.u32.totalorder %s1014_s20, %s1339_s8 }
  0x8d   :  { %p1020_p10 = pnand %p1018_p9, %p1015_p8 }
  0x8f   :  { %1023 = shalt.err (!%p1020_p10)
}
  0x90   :  { %s1024_s27 = scalar_lea.vmem %s117_s0, 16  ;;  %s1028_s6 = scalar_lea.vmem %s117_s0, 32 }
  0x91   :  { %p1025_p11 = scmp.ne.s32.totalorder %s117_s0, %s1024_s27  ;;  %p1029_p12 = scmp.lt.s32.totalorder %s117_s0, %s117_s0 }
  0x92   :  { %p1030_p13 = scmp.lt.s32.totalorder %s1028_s6, %s1024_s27 }
  0x94   :  { %p1031_p0 = por %p1030_p13, %p1029_p12 }
  0x96   :  { %p1032_p1 = pnand %p1031_p0, %p1025_p11 }
  0x98   :  { %1035 = shalt.err (!%p1032_p1)
}
  0x99   :  { %119 = dma.hbm_to_vmem [thread:$0]  %s1339_s8, 16, %s117_s0, [#allocation15]  }
  0x9a   :  { %1058 = dma.done.wait [#allocation3], 128  }
  0x9b   :  { %1059 = vsyncadd [#allocation3], 4294967168 }
  0x9c   :  { %1060 = dma.done.wait [#allocation6], 2048  }
  0x9d   :  { %1061 = vsyncadd [#allocation6], 4294965248 }
  0x9e   :  { %1062 = dma.done.wait [#allocation9], 2048  }
  0x9f   :  { %1063 = vsyncadd [#allocation9], 4294965248 }
  0xa0   :  { %1064 = dma.done.wait [#allocation12], 32  }
  0xa1   :  { %1065 = vsyncadd [#allocation12], 4294967264 }
  0xa2   :  { %1066 = dma.done.wait [#allocation15], 32  }
  0xa3   :  { %1067 = vsyncadd [#allocation15], 4294967264  ;;  %v1081_v0 = vmov 0.0   ;;  %vm1082_vm0 = vmmov 0   ;;  %v805_v1 = vld [vmem:[#allocation5] sm:$0xff]   ;;  %v806_v2 = vld [vmem:[#allocation5 + $0x8] sm:$0xff]   ;;  %v168_v23 = vlaneseq }
  0xa4   :  { %709 = vmatprep.subr.bf16.mxu0 %v1081_v0  ;;  %725 = vmatprep.mubr.msk.bf16.mxu0 %vm1082_vm0, %v1081_v0  ;;  %v807_v3 = vld [vmem:[#allocation5 + $0x10] sm:$0xff]   ;;  %v814_v4 = vld [vmem:[#allocation7] sm:$0xff]   ;;  %v808_v5 = vld [vmem:[#allocation5 + $0x18] sm:$0xff]   ;;  %s1083_s8 = smov [#allocation17]  }
  0xa5   :  { %729 = vmatprep.subr.bf16.mxu1 %v1081_v0  ;;  %745 = vmatprep.mubr.msk.bf16.mxu1 %vm1082_vm0, %v1081_v0  ;;  %v815_v6 = vld [vmem:[#allocation7 + $0x8] sm:$0xff]   ;;  %v809_v7 = vld [vmem:[#allocation5 + $0x20] sm:$0xff]   ;;  %v816_v8 = vld [vmem:[#allocation7 + $0x10] sm:$0xff]   ;;  %v169_v24 = vshrl.u32 %v168_v23, 7  ;;  %s624_s29 = sshll.u32 %s1083_s8, 4  ;;  %s625_s29 = int_to_ptr.vmem [resolvable:$true] %s624_s29 }
  0xa6   :  { %710 = vmatpush3.bf16.msra.mxu0 %v805_v1  ;;  %730 = vmatpush3.bf16.msra.mxu1 %v814_v4  ;;  %v810_v9 = vld [vmem:[#allocation5 + $0x28] sm:$0xff]   ;;  %v817_v10 = vld [vmem:[#allocation7 + $0x18] sm:$0xff]   ;;  %v811_v11 = vld [vmem:[#allocation5 + $0x30] sm:$0xff]   ;;  %s1036_s7 = scalar_lea.vmem %s625_s29, 256  ;;  %p1041_p3 = scmp.lt.s32.totalorder %s625_s29, %s625_s29 }
  0xa7   :  { %711 = vmatprep.subr.bf16.mxu0 %v1081_v0  ;;  %731 = vmatprep.subr.bf16.mxu1 %v1081_v0  ;;  %v818_v12 = vld [vmem:[#allocation7 + $0x20] sm:$0xff]   ;;  %v812_v13 = vld [vmem:[#allocation5 + $0x38] sm:$0xff]   ;;  %v819_v14 = vld [vmem:[#allocation7 + $0x28] sm:$0xff]   ;;  %v1302_v27 = vsub.s32 0, %v169_v24  ;;  %p1037_p2 = scmp.ne.s32.totalorder %s625_s29, %s1036_s7  ;;  %p1042_p4 = scmp.lt.s32.totalorder %s1036_s7, %s1036_s7 }
  0xa8   :  { %v813_v15 = vld [vmem:[#allocation2] sm:$0xff]   ;;  %v820_v16 = vld [vmem:[#allocation7 + $0x30] sm:$0xff]   ;;  %v822_v18 = vld [vmem:[#allocation8] sm:$0xff]  }
  0xa9   :  { %v821_v17 = vld [vmem:[#allocation7 + $0x38] sm:$0xff]   ;;  %v823_v19 = vld [vmem:[#allocation8 + $0x8] sm:$0xff]   ;;  %v824_v20 = vld [vmem:[#allocation8 + $0x10] sm:$0xff]   ;;  %p1043_p5 = por %p1042_p4, %p1041_p3 }
  0xaa   :  { %712 = vmatpush3.bf16.msra.mxu0 %v806_v2  ;;  %732 = vmatpush3.bf16.msra.mxu1 %v815_v6  ;;  %v825_v21 = vld [vmem:[#allocation8 + $0x18] sm:$0xff]   ;;  %v826_v22 = vld [vmem:[#allocation8 + $0x20] sm:$0xff]   ;;  %v827_v38 = vld [vmem:[#allocation8 + $0x28] sm:$0xff]  }
  0xab   :  { %713 = vmatprep.subr.bf16.mxu0 %v1081_v0  ;;  %733 = vmatprep.subr.bf16.mxu1 %v1081_v0  ;;  %v166_v25 = vld [vmem:[#allocation11] sm:$0x1]  ;;  %v828_v39 = vld [vmem:[#allocation8 + $0x30] sm:$0xff]   ;;  %v829_v40 = vld [vmem:[#allocation8 + $0x38] sm:$0xff]   ;;  %p1044_p6 = pnand %p1043_p5, %p1037_p2 }
  0xac   :  { %v167_v26 = vunpack.c.l.bf16 %v166_v25  ;;  %v830_v41 = vld [vmem:[#allocation10] sm:$0xff]   ;;  %v831_v42 = vld [vmem:[#allocation10 + $0x8] sm:$0xff]   ;;  %v832_v43 = vld [vmem:[#allocation10 + $0x10] sm:$0xff]  }
  0xad   :  { %v833_v44 = vld [vmem:[#allocation10 + $0x18] sm:$0xff]   ;;  %v834_v45 = vld [vmem:[#allocation10 + $0x20] sm:$0xff]   ;;  %v835_v62 = vld [vmem:[#allocation10 + $0x28] sm:$0xff]  }
  0xae   :  { %714 = vmatpush3.bf16.msra.mxu0 %v807_v3  ;;  %734 = vmatpush3.bf16.msra.mxu1 %v816_v8  ;;  %v171_v28 = vrot.slane %v167_v26, %v1302_v27  ;;  %v286_v46 = vld [vmem:[#allocation13] sm:$0x1]  ;;  %v836_v63 = vld [vmem:[#allocation10 + $0x30] sm:$0xff]   ;;  %v837_v1 = vld [vmem:[#allocation10 + $0x38] sm:$0xff]  }
  0xaf   :  { %715 = vmatprep.subr.bf16.mxu0 %v1081_v0  ;;  %735 = vmatprep.subr.bf16.mxu1 %v1081_v0  ;;  %v287_v47 = vunpack.c.l.bf16 %v286_v46  ;;  %v404_v2 = vld [vmem:[#allocation14] sm:$0x1] }
  0xb0   :  { %v405_v3 = vunpack.c.l.bf16 %v404_v2 }
  0xb1   :  { %v291_v48 = vrot.slane %v287_v47, %v1302_v27 }
  0xb2   :  { %716 = vmatpush3.bf16.msra.mxu0 %v808_v5  ;;  %736 = vmatpush3.bf16.msra.mxu1 %v817_v10  ;;  %v409_v4 = vrot.slane %v405_v3, %v1302_v27 }
  0xb3   :  { %717 = vmatprep.subr.bf16.mxu0 %v1081_v0  ;;  %737 = vmatprep.subr.bf16.mxu1 %v1081_v0 }
  0xb6   :  { %718 = vmatpush3.bf16.msra.mxu0 %v809_v7  ;;  %738 = vmatpush3.bf16.msra.mxu1 %v818_v12 }
  0xb7   :  { %719 = vmatprep.subr.bf16.mxu0 %v1081_v0  ;;  %739 = vmatprep.subr.bf16.mxu1 %v1081_v0 }
  0xba   :  { %720 = vmatpush3.bf16.msra.mxu0 %v810_v9  ;;  %740 = vmatpush3.bf16.msra.mxu1 %v819_v14 }
  0xbb   :  { %721 = vmatprep.subr.bf16.mxu0 %v1081_v0  ;;  %741 = vmatprep.subr.bf16.mxu1 %v1081_v0 }
  0xbe   :  { %722 = vmatpush3.bf16.msra.mxu0 %v811_v11  ;;  %742 = vmatpush3.bf16.msra.mxu1 %v820_v16 }
  0xbf   :  { %723 = vmatprep.subr.bf16.mxu0 %v1081_v0  ;;  %743 = vmatprep.subr.bf16.mxu1 %v1081_v0 }
  0xc2   :  { %724 = vmatpush3.bf16.msra.mxu0 %v812_v13  ;;  %744 = vmatpush3.bf16.msra.mxu1 %v821_v17 }
  0xc3   :  { %749 = vmatprep.subr.bf16.mxu0 %v1081_v0  ;;  %769 = vmatprep.subr.bf16.mxu1 %v1081_v0 }
  0xc5   :  { %726 = vmatmul.mubr.bf16.vlgmr.msra.gmra.mrb[0].mxu0 %v813_v15 }
  0xc6   :  { %765 = vmatprep.mubr.msk.bf16.mxu0 %vm1082_vm0, %v1081_v0  ;;  %750 = vmatpush3.bf16.msra.mxu0 %v822_v18 }
  0xc7   :  { %751 = vmatprep.subr.bf16.mxu0 %v1081_v0 }
  0xca   :  { %752 = vmatpush3.bf16.msra.mxu0 %v823_v19 }
  0xcb   :  { %753 = vmatprep.subr.bf16.mxu0 %v1081_v0 }
  0xce   :  { %754 = vmatpush3.bf16.msra.mxu0 %v824_v20 }
  0xcf   :  { %755 = vmatprep.subr.bf16.mxu0 %v1081_v0 }
  0xd2   :  { %756 = vmatpush3.bf16.msra.mxu0 %v825_v21 }
  0xd3   :  { %757 = vmatprep.subr.bf16.mxu0 %v1081_v0 }
  0xd6   :  { %758 = vmatpush3.bf16.msra.mxu0 %v826_v22 }
  0xd7   :  { %759 = vmatprep.subr.bf16.mxu0 %v1081_v0 }
  0xda   :  { %760 = vmatpush3.bf16.msra.mxu0 %v827_v38 }
  0xdb   :  { %761 = vmatprep.subr.bf16.mxu0 %v1081_v0 }
  0xde   :  { %762 = vmatpush3.bf16.msra.mxu0 %v828_v39 }
  0xdf   :  { %763 = vmatprep.subr.bf16.mxu0 %v1081_v0 }
  0xe2   :  { %764 = vmatpush3.bf16.msra.mxu0 %v829_v40 }
 0x198   :  { %v260_v29 = vpop.f32.mrb[0].mxu0 }
 0x199   :  { %v261_v30 = vadd.f32 %v260_v29, %v171_v28  ;;  %v727_v31 = vpop.f32.mrb[1].mxu0 }
 0x19a   :  { %v263_v32 = vpop.f32.mrb[2].mxu0 }
 0x19b   :  { %v264_v33 = vadd.f32 %v263_v32, %v171_v28  ;;  %v728_v34 = vpop.f32.mrb[3].mxu0  ;;  %v267_v35 = vmax.f32 %v261_v30, 0.0 }
 0x19d   :  { %v268_v36 = vmax.f32 %v264_v33, 0.0 }
 0x19f   :  { %v269_v37 = vpack.c.bf16 %v268_v36, %v267_v35 }
 0x1a1   :  { %746 = vmatmul.mubr.bf16.vlgmr.msra.gmra.mrb[0].mxu1 %v269_v37  ;;  %v383_v54 = vunpack.c.l.bf16 %v269_v37  ;;  %v384_v59 = vunpack.c.h.bf16 %v269_v37 }
 0x1a2   :  { %785 = vmatprep.mubr.msk.bf16.mxu1 %vm1082_vm0, %v1081_v0  ;;  %770 = vmatpush3.bf16.msra.mxu1 %v830_v41 }
 0x1a3   :  { %771 = vmatprep.subr.bf16.mxu1 %v1081_v0 }
 0x1a6   :  { %772 = vmatpush3.bf16.msra.mxu1 %v831_v42 }
 0x1a7   :  { %773 = vmatprep.subr.bf16.mxu1 %v1081_v0 }
 0x1aa   :  { %774 = vmatpush3.bf16.msra.mxu1 %v832_v43 }
 0x1ab   :  { %775 = vmatprep.subr.bf16.mxu1 %v1081_v0 }
 0x1ae   :  { %776 = vmatpush3.bf16.msra.mxu1 %v833_v44 }
 0x1af   :  { %777 = vmatprep.subr.bf16.mxu1 %v1081_v0 }
 0x1b2   :  { %778 = vmatpush3.bf16.msra.mxu1 %v834_v45 }
 0x1b3   :  { %779 = vmatprep.subr.bf16.mxu1 %v1081_v0 }
 0x1b6   :  { %780 = vmatpush3.bf16.msra.mxu1 %v835_v62 }
 0x1b7   :  { %781 = vmatprep.subr.bf16.mxu1 %v1081_v0 }
 0x1ba   :  { %782 = vmatpush3.bf16.msra.mxu1 %v836_v63 }
 0x1bb   :  { %783 = vmatprep.subr.bf16.mxu1 %v1081_v0  ;;  %v522_v0 = vld [vmem:[#allocation16] sm:$0x1] }
 0x1bc   :  { %v523_v18 = vunpack.c.l.bf16 %v522_v0 }
 0x1be   :  { %784 = vmatpush3.bf16.msra.mxu1 %v837_v1  ;;  %v527_v19 = vrot.slane %v523_v18, %v1302_v27 }
 0x274   :  { %v374_v49 = vpop.f32.mrb[0].mxu1 }
 0x275   :  { %v375_v50 = vadd.f32 %v374_v49, %v291_v48  ;;  %v747_v51 = vpop.f32.mrb[1].mxu1 }
 0x276   :  { %v377_v52 = vpop.f32.mrb[2].mxu1 }
 0x277   :  { %v381_v53 = vmax.f32 %v375_v50, 0.0  ;;  %v378_v55 = vadd.f32 %v377_v52, %v291_v48  ;;  %v748_v56 = vpop.f32.mrb[3].mxu1 }
 0x279   :  { %v385_v57 = vadd.f32 %v383_v54, %v381_v53  ;;  %v382_v58 = vmax.f32 %v378_v55, 0.0 }
 0x27b   :  { %v386_v60 = vadd.f32 %v384_v59, %v382_v58 }
 0x27d   :  { %v387_v61 = vpack.c.bf16 %v386_v60, %v385_v57 }
 0x27f   :  { %766 = vmatmul.mubr.bf16.vlgmr.msra.gmra.mrb[4].mxu0 %v387_v61  ;;  %v501_v10 = vunpack.c.l.bf16 %v387_v61  ;;  %v502_v15 = vunpack.c.h.bf16 %v387_v61 }
 0x352   :  { %v492_v5 = vpop.f32.mrb[4].mxu0 }
 0x353   :  { %v493_v6 = vadd.f32 %v492_v5, %v409_v4  ;;  %v767_v7 = vpop.f32.mrb[5].mxu0 }
 0x354   :  { %v495_v8 = vpop.f32.mrb[6].mxu0 }
 0x355   :  { %v499_v9 = vmax.f32 %v493_v6, 0.0  ;;  %v496_v11 = vadd.f32 %v495_v8, %v409_v4  ;;  %v768_v12 = vpop.f32.mrb[7].mxu0 }
 0x357   :  { %v503_v13 = vadd.f32 %v501_v10, %v499_v9  ;;  %v500_v14 = vmax.f32 %v496_v11, 0.0 }
 0x359   :  { %v504_v16 = vadd.f32 %v502_v15, %v500_v14 }
 0x35b   :  { %v505_v17 = vpack.c.bf16 %v504_v16, %v503_v13 }
 0x35d   :  { %786 = vmatmul.mubr.bf16.vlgmr.msra.gmra.mrb[4].mxu1 %v505_v17 }
 0x430   :  { %v610_v20 = vpop.f32.mrb[4].mxu1 }
 0x431   :  { %v611_v21 = vadd.f32 %v610_v20, %v527_v19  ;;  %v787_v22 = vpop.f32.mrb[5].mxu1 }
 0x432   :  { %v613_v23 = vpop.f32.mrb[6].mxu1 }
 0x433   :  { %617 = vst [vmem:[#allocation17] sm:$0xff] %v611_v21  ;;  %v614_v24 = vadd.f32 %v613_v23, %v527_v19  ;;  %v788_v25 = vpop.f32.mrb[7].mxu1 }
 0x435   :  { %618 = vst [vmem:[#allocation17 + $0x8] sm:$0xff] %v614_v24 }
 0x436   :  { %1047 = shalt.err (!%p1044_p6)
}
 0x437   :  { %s1048_s17 = scalar_lea.hbm %s1340_s9, 256 }
 0x438   :  { %p1049_p7 = scmp.ne.s32.totalorder %s1340_s9, %s1048_s17  ;;  %p1052_p8 = scmp.lt.u32.totalorder %s1048_s17, %s1340_s9 }
 0x43a   :  { %p1054_p9 = pnand %p1052_p8, %p1049_p7 }
 0x43c   :  { %1057 = shalt.err (!%p1054_p9)
}
 0x43d   :  { %s1084_s10 = smov 128   ;;  %s1085_s14 = smov 8  }
 0x43e   :  { %630 = dma.vmem_to_hbm [thread:$0]  %s625_s29, 256, %s1340_s9, [#allocation4], %s1084_s10, %s1084_s10, %s1085_s14  }
 0x43f   :  { %1068 = dma.done.wait [#allocation4], 256  }
 0x440   :  { %1069 = vsyncadd [#allocation4], 4294967040 }
 0x441   :  { %634 = vsyncpa [#allocation3], 1 }
 0x442   :  { %635 = vsyncpa [#allocation6], 1 }
 0x443   :  { %636 = vsyncpa [#allocation9], 1 }
 0x444   :  { %637 = vsyncpa [#allocation12], 1 }
 0x445   :  { %638 = vsyncpa [#allocation15], 1 }
 0x446   :  { %639 = vsyncpa [#allocation4], 1 }

</bundles_post_ra>
